<compile_context>
chip_gen: v6e
topology: v6e:2x2x1
jax: 0.10.0
libtpu: 0.0.40
codegen_flags: <defaults>
</compile_context>

<pallas_src>
import functools

import jax
import jax.numpy as jnp
from jax.experimental import pallas as pl
from jax.experimental.pallas import tpu as pltpu


# ---------------------------------------------------------------------------
# Fused Pallas kernel: conv2+bn2+relu -> conv1+bn1 -> +identity -> relu
# ---------------------------------------------------------------------------
def _basic_block_dec_kernel(x_ref, m_ref, w2_ref, w1_ref, o_ref,
                            buf_ref, patch_ref, *, H, W, P):
    """One batch element per grid step.

    x_ref     : (1, C, H*W)     input activation (channels on sublanes, HW on lanes)
    m_ref     : (2, H*W)        edge masks for the dx = -1 / +1 taps
    w2_ref    : (C, K_PAD)      conv2 weights, BN2 scale folded in, bias column
    w1_ref    : (C, K_PAD)      conv1 weights, BN1 scale folded in, bias column
    o_ref     : (1, C, H*W)     output
    buf_ref   : (C, H*W + 2*P)  zero-padded flattened line buffer (VMEM scratch)
    patch_ref : (K_PAD, H*W)    im2col matrix (VMEM scratch), K_PAD >= 9*C + 1
    """
    C = x_ref.shape[1]
    HW = H * W
    K9 = 9 * C

    # One-time init: zero the padded line buffer and the im2col scratch, and write
    # the constant ones-row that folds the BN bias into the matmul.
    buf_ref[...] = jnp.zeros_like(buf_ref)
    patch_ref[...] = jnp.zeros_like(patch_ref)
    patch_ref[pl.ds(K9, 1), :] = jnp.ones((1, HW), jnp.float32)

    m_left = m_ref[pl.ds(0, 1), :]      # (1, HW): source column px-1 is in-bounds
    m_right = m_ref[pl.ds(1, 1), :]     # (1, HW): source column px+1 is in-bounds

    def conv3x3_bn(act, w_ref):
        """act (C, HW) f32 -> (C, HW) f32: 3x3 'same' conv with folded BN."""
        # Place the activation in the interior of the zero-padded line buffer.
        # (offset P and size HW are both 128-aligned -> unmasked stores)
        buf_ref[:, pl.ds(P, HW)] = act
        # Build the im2col matrix: 9 shifted copies, rows grouped by tap.  Vertical
        # out-of-bounds taps land in the zero pads of buf; horizontal out-of-bounds
        # columns are zeroed with the precomputed edge masks.
        t = 0
        for dy in (-1, 0, 1):
            for dx in (-1, 0, 1):
                tap = buf_ref[:, pl.ds(P + dy * W + dx, HW)]     # (C, HW)
                if dx == -1:
                    tap = tap * m_left
                elif dx == 1:
                    tap = tap * m_right
                patch_ref[pl.ds(t * C, C), :] = tap
                t += 1
        # Single MXU matmul; BN scale lives in w, BN bias rides on the ones-row.
        return jnp.dot(w_ref[...], patch_ref[...],
                       preferred_element_type=jnp.float32)       # (C, HW)

    x = x_ref[0].astype(jnp.float32)                             # identity path
    h = jnp.maximum(conv3x3_bn(x, w2_ref), 0.0)                  # relu(bn2(conv2(x)))
    y = conv3x3_bn(h, w1_ref) + x                                # bn1(conv1(h)) + id
    o_ref[0] = jnp.maximum(y, 0.0).astype(o_ref.dtype)


# ---------------------------------------------------------------------------
# Wrapper-side parameter preparation (one-time weight transforms)
# ---------------------------------------------------------------------------
def _fold_conv_bn_matrix(w_t, gamma, beta, rmean, rvar, k_pad, eps=1e-5):
    """ConvTranspose2d weight (Cin, Cout, 3, 3) + BN stats -> (Cout, k_pad) matrix.

    Column order is (ky*3 + kx)*Cin + ci (matches the im2col row order), the BN
    scale is folded into the weights, the BN bias sits in column 9*Cin (paired with
    the kernel's ones-row), and the remaining columns are zero padding.
    """
    cin, cout = w_t.shape[0], w_t.shape[1]
    # convT(stride=1, pad=1) == conv(pad=1) with spatially flipped, channel-swapped W
    w2d = jnp.flip(w_t, axis=(2, 3)).transpose(1, 2, 3, 0).reshape(cout, 9 * cin)
    scale = gamma / jnp.sqrt(rvar + eps)
    bias = beta - rmean * scale
    mat = jnp.concatenate([w2d * scale[:, None], bias[:, None]], axis=1)
    return jnp.pad(mat, ((0, 0), (0, k_pad - mat.shape[1])))


def _edge_masks(H, W):
    """(2, H*W) f32: row 0 -> column px-1 in-bounds, row 1 -> column px+1 in-bounds."""
    px = jnp.arange(H * W, dtype=jnp.int32) % W
    m_left = (px >= 1).astype(jnp.float32)
    m_right = (px <= W - 2).astype(jnp.float32)
    return jnp.stack([m_left, m_right], axis=0)


def make_params(key, inplanes, planes):
    ks = jax.random.split(key, 10)
    p = {}
    # conv2: ConvTranspose2d(planes, planes, 3)   weight (planes, planes, 3, 3)
    p["w2"] = 0.1 * jax.random.normal(ks[0], (planes, planes, 3, 3), jnp.float32)
    # conv1: ConvTranspose2d(planes, inplanes, 3) weight (planes, inplanes, 3, 3)
    p["w1"] = 0.1 * jax.random.normal(ks[1], (planes, inplanes, 3, 3), jnp.float32)
    # bn2 over `planes`, bn1 over `inplanes` (non-trivial running stats)
    p["g2"] = 1.0 + 0.1 * jax.random.normal(ks[2], (planes,), jnp.float32)
    p["b2"] = 0.1 * jax.random.normal(ks[3], (planes,), jnp.float32)
    p["m2"] = 0.1 * jax.random.normal(ks[4], (planes,), jnp.float32)
    p["v2"] = jax.random.uniform(ks[5], (planes,), jnp.float32, 0.5, 1.5)
    p["g1"] = 1.0 + 0.1 * jax.random.normal(ks[6], (inplanes,), jnp.float32)
    p["b1"] = 0.1 * jax.random.normal(ks[7], (inplanes,), jnp.float32)
    p["m1"] = 0.1 * jax.random.normal(ks[8], (inplanes,), jnp.float32)
    p["v1"] = jax.random.uniform(ks[9], (inplanes,), jnp.float32, 0.5, 1.5)
    return p


# ---------------------------------------------------------------------------
# Forward (single fused pallas_call, grid over batch)
# ---------------------------------------------------------------------------
@jax.jit
def basic_block_dec_forward(x_nchw, params):
    """BasicBlockDec forward with stride=1, output_padding=0, upsample=None."""
    B, C, H, W = x_nchw.shape
    # residual path of this configuration requires inplanes == planes == C
    assert params["w1"].shape == (C, C, 3, 3) and params["w2"].shape == (C, C, 3, 3)

    HW = H * W
    k_pad = ((9 * C + 1 + 7) // 8) * 8               # im2col K rounded to sublanes
    P = ((W + 1 + 127) // 128) * 128                 # 128-aligned pad >= W+1
    L = HW + 2 * P                                   # padded line-buffer width

    x_flat = x_nchw.reshape(B, C, HW)                # NCHW -> (B, C, HW), lane-dense
    masks = _edge_masks(H, W)
    w2 = _fold_conv_bn_matrix(params["w2"], params["g2"], params["b2"],
                              params["m2"], params["v2"], k_pad)
    w1 = _fold_conv_bn_matrix(params["w1"], params["g1"], params["b1"],
                              params["m1"], params["v1"], k_pad)

    kernel = functools.partial(_basic_block_dec_kernel, H=H, W=W, P=P)
    y = pl.pallas_call(
        kernel,
        out_shape=jax.ShapeDtypeStruct((B, C, HW), x_nchw.dtype),
        grid=(B,),
        in_specs=[
            pl.BlockSpec((1, C, HW), lambda b: (b, 0, 0)),        # x
            pl.BlockSpec((2, HW), lambda b: (0, 0)),              # edge masks
            pl.BlockSpec((C, k_pad), lambda b: (0, 0)),           # conv2+bn2 matrix
            pl.BlockSpec((C, k_pad), lambda b: (0, 0)),           # conv1+bn1 matrix
        ],
        out_specs=pl.BlockSpec((1, C, HW), lambda b: (b, 0, 0)),
        scratch_shapes=[
            pltpu.VMEM((C, L), jnp.float32),                      # padded line buffer
            pltpu.VMEM((k_pad, HW), jnp.float32),                 # im2col matrix
        ],
        compiler_params=pltpu.CompilerParams(
            dimension_semantics=("parallel",)),
    )(x_flat, masks, w2, w1)
    return y.reshape(B, C, H, W)


# ---------------------------------------------------------------------------
# Pure-JAX reference (same module semantics) for a correctness cross-check
# ---------------------------------------------------------------------------
def _reference_forward(x_nchw, params, eps=1e-5):
    def conv(a, w_t):   # a: NCHW, w_t: ConvTranspose2d weight (Cin, Cout, 3, 3)
        w = jnp.flip(w_t, axis=(2, 3)).transpose(1, 0, 2, 3)      # OIHW
        return jax.lax.conv_general_dilated(
            a, w, (1, 1), "SAME", dimension_numbers=("NCHW", "OIHW", "NCHW"))

    def bn(a, g, b, m, v):
        s = g / jnp.sqrt(v + eps)
        return a * s[None, :, None, None] + (b - m * s)[None, :, None, None]

    out = jnp.maximum(bn(conv(x_nchw, params["w2"]), params["g2"], params["b2"],
                         params["m2"], params["v2"]), 0.0)
    y = bn(conv(out, params["w1"]), params["g1"], params["b1"],
           params["m1"], params["v1"]) + x_nchw
    return jnp.maximum(y, 0.0)


if __name__ == "__main__":
    # Small shapes consistent with the module: stride=1 / upsample=None path
    # requires inplanes == planes for the residual add.
    B, C, H, W = 2, 4, 16, 16            # x: (2, 4, 16, 16) NCHW
    inplanes = planes = C

    key = jax.random.PRNGKey(0)
    kx, kp = jax.random.split(key)
    x = jax.random.normal(kx, (B, C, H, W), jnp.float32)
    params = make_params(kp, inplanes, planes)

    y = jax.block_until_ready(basic_block_dec_forward(x, params))
    y_ref = _reference_forward(x, params)

    assert y.shape == (B, inplanes, H, W)
    assert jnp.allclose(y, y_ref, atol=1e-4, rtol=1e-4), "mismatch vs reference"

    print("KERNEL_OK")
</pallas_src>

<mosaic_0001>
module attributes {stable_mosaic.version = 11 : i64} {
  func.func @_basic_block_dec_kernel(%arg0: i32, %arg1: memref<1x4x256xf32, #tpu.memory_space<vmem>>, %arg2: memref<2x256xf32, #tpu.memory_space<vmem>>, %arg3: memref<4x40xf32, #tpu.memory_space<vmem>>, %arg4: memref<4x40xf32, #tpu.memory_space<vmem>>, %arg5: memref<1x4x256xf32, #tpu.memory_space<vmem>>, %arg6: memref<4x512xf32, #tpu.memory_space<vmem>>, %arg7: memref<40x256xf32, #tpu.memory_space<vmem>>) attributes {dimension_semantics = [#tpu.dimension_semantics<parallel>], iteration_bounds = array<i64: 2>, scalar_prefetch = 0 : i64, scratch_operands = 2 : i64, tpu.core_type = #tpu.core_type<tc>, window_params = [{transform_indices = @transform_0, window_bounds = array<i64: 1, 4, 256>}, {pipeline_mode = #tpu.pipeline_mode<synchronous>, transform_indices = @transform_1, window_bounds = array<i64: 2, 256>}, {pipeline_mode = #tpu.pipeline_mode<synchronous>, transform_indices = @transform_2, window_bounds = array<i64: 4, 40>}, {pipeline_mode = #tpu.pipeline_mode<synchronous>, transform_indices = @transform_3, window_bounds = array<i64: 4, 40>}, {transform_indices = @transform_4, window_bounds = array<i64: 1, 4, 256>}]} {
    %cst = arith.constant 0.000000e+00 : f32
    %0 = vector.broadcast %cst : f32 to vector<4x512xf32>
    %c0 = arith.constant 0 : index
    %c0_0 = arith.constant 0 : index
    %1 = vector.load %arg6[%c0, %c0_0] : memref<4x512xf32, #tpu.memory_space<vmem>>, vector<4x512xf32>
    tpu.vector_store %arg6[%c0, %c0_0], %0 {strides = array<i32>} : memref<4x512xf32, #tpu.memory_space<vmem>>, vector<4x512xf32>,
    %cst_1 = arith.constant 0.000000e+00 : f32
    %2 = vector.broadcast %cst_1 : f32 to vector<40x256xf32>
    %c0_2 = arith.constant 0 : index
    %c0_3 = arith.constant 0 : index
    %3 = vector.load %arg7[%c0_2, %c0_3] : memref<40x256xf32, #tpu.memory_space<vmem>>, vector<40x256xf32>
    tpu.vector_store %arg7[%c0_2, %c0_3], %2 {strides = array<i32>} : memref<40x256xf32, #tpu.memory_space<vmem>>, vector<40x256xf32>,
    %cst_4 = arith.constant 1.000000e+00 : f32
    %4 = vector.broadcast %cst_4 : f32 to vector<1x256xf32>
    %c36 = arith.constant 36 : index
    %c0_5 = arith.constant 0 : index
    %5 = vector.load %arg7[%c36, %c0_5] : memref<40x256xf32, #tpu.memory_space<vmem>>, vector<1x256xf32>
    tpu.vector_store %arg7[%c36, %c0_5], %4 {strides = array<i32>} : memref<40x256xf32, #tpu.memory_space<vmem>>, vector<1x256xf32>,
    %c0_6 = arith.constant 0 : index
    %c0_7 = arith.constant 0 : index
    %6 = vector.load %arg2[%c0_6, %c0_7] : memref<2x256xf32, #tpu.memory_space<vmem>>, vector<1x256xf32>
    %c1 = arith.constant 1 : index
    %c0_8 = arith.constant 0 : index
    %7 = vector.load %arg2[%c1, %c0_8] : memref<2x256xf32, #tpu.memory_space<vmem>>, vector<1x256xf32>
    %c0_9 = arith.constant 0 : index
    %c0_10 = arith.constant 0 : index
    %c0_11 = arith.constant 0 : index
    %8 = vector.load %arg1[%c0_9, %c0_10, %c0_11] : memref<1x4x256xf32, #tpu.memory_space<vmem>>, vector<1x4x256xf32>
    %9 = vector.shape_cast %8 : vector<1x4x256xf32> to vector<4x256xf32>
    %c0_12 = arith.constant 0 : index
    %c128 = arith.constant 128 : index
    %10 = vector.load %arg6[%c0_12, %c128] : memref<4x512xf32, #tpu.memory_space<vmem>>, vector<4x256xf32>
    tpu.vector_store %arg6[%c0_12, %c128], %9 {strides = array<i32>} : memref<4x512xf32, #tpu.memory_space<vmem>>, vector<4x256xf32>,
    %c0_13 = arith.constant 0 : index
    %c111 = arith.constant 111 : index
    %11 = vector.load %arg6[%c0_13, %c111] : memref<4x512xf32, #tpu.memory_space<vmem>>, vector<4x256xf32>
    %12 = vector.broadcast %6 : vector<1x256xf32> to vector<4x256xf32>
    %13 = arith.mulf %11, %12 : vector<4x256xf32>
    %c0_14 = arith.constant 0 : index
    %c0_15 = arith.constant 0 : index
    %14 = vector.load %arg7[%c0_14, %c0_15] : memref<40x256xf32, #tpu.memory_space<vmem>>, vector<4x256xf32>
    tpu.vector_store %arg7[%c0_14, %c0_15], %13 {strides = array<i32>} : memref<40x256xf32, #tpu.memory_space<vmem>>, vector<4x256xf32>,
    %c0_16 = arith.constant 0 : index
    %c112 = arith.constant 112 : index
    %15 = vector.load %arg6[%c0_16, %c112] : memref<4x512xf32, #tpu.memory_space<vmem>>, vector<4x256xf32>
    %c4 = arith.constant 4 : index
    %c0_17 = arith.constant 0 : index
    %16 = vector.load %arg7[%c4, %c0_17] : memref<40x256xf32, #tpu.memory_space<vmem>>, vector<4x256xf32>
    tpu.vector_store %arg7[%c4, %c0_17], %15 {strides = array<i32>} : memref<40x256xf32, #tpu.memory_space<vmem>>, vector<4x256xf32>,
    %c0_18 = arith.constant 0 : index
    %c113 = arith.constant 113 : index
    %17 = vector.load %arg6[%c0_18, %c113] : memref<4x512xf32, #tpu.memory_space<vmem>>, vector<4x256xf32>
    %18 = vector.broadcast %7 : vector<1x256xf32> to vector<4x256xf32>
    %19 = arith.mulf %17, %18 : vector<4x256xf32>
    %c8 = arith.constant 8 : index
    %c0_19 = arith.constant 0 : index
    %20 = vector.load %arg7[%c8, %c0_19] : memref<40x256xf32, #tpu.memory_space<vmem>>, vector<4x256xf32>
    tpu.vector_store %arg7[%c8, %c0_19], %19 {strides = array<i32>} : memref<40x256xf32, #tpu.memory_space<vmem>>, vector<4x256xf32>,
    %c0_20 = arith.constant 0 : index
    %c127 = arith.constant 127 : index
    %21 = vector.load %arg6[%c0_20, %c127] : memref<4x512xf32, #tpu.memory_space<vmem>>, vector<4x256xf32>
    %22 = vector.broadcast %6 : vector<1x256xf32> to vector<4x256xf32>
    %23 = arith.mulf %21, %22 : vector<4x256xf32>
    %c12 = arith.constant 12 : index
    %c0_21 = arith.constant 0 : index
    %24 = vector.load %arg7[%c12, %c0_21] : memref<40x256xf32, #tpu.memory_space<vmem>>, vector<4x256xf32>
    tpu.vector_store %arg7[%c12, %c0_21], %23 {strides = array<i32>} : memref<40x256xf32, #tpu.memory_space<vmem>>, vector<4x256xf32>,
    %c0_22 = arith.constant 0 : index
    %c128_23 = arith.constant 128 : index
    %25 = vector.load %arg6[%c0_22, %c128_23] : memref<4x512xf32, #tpu.memory_space<vmem>>, vector<4x256xf32>
    %c16 = arith.constant 16 : index
    %c0_24 = arith.constant 0 : index
    %26 = vector.load %arg7[%c16, %c0_24] : memref<40x256xf32, #tpu.memory_space<vmem>>, vector<4x256xf32>
    tpu.vector_store %arg7[%c16, %c0_24], %25 {strides = array<i32>} : memref<40x256xf32, #tpu.memory_space<vmem>>, vector<4x256xf32>,
    %c0_25 = arith.constant 0 : index
    %c129 = arith.constant 129 : index
    %27 = vector.load %arg6[%c0_25, %c129] : memref<4x512xf32, #tpu.memory_space<vmem>>, vector<4x256xf32>
    %28 = vector.broadcast %7 : vector<1x256xf32> to vector<4x256xf32>
    %29 = arith.mulf %27, %28 : vector<4x256xf32>
    %c20 = arith.constant 20 : index
    %c0_26 = arith.constant 0 : index
    %30 = vector.load %arg7[%c20, %c0_26] : memref<40x256xf32, #tpu.memory_space<vmem>>, vector<4x256xf32>
    tpu.vector_store %arg7[%c20, %c0_26], %29 {strides = array<i32>} : memref<40x256xf32, #tpu.memory_space<vmem>>, vector<4x256xf32>,
    %c0_27 = arith.constant 0 : index
    %c143 = arith.constant 143 : index
    %31 = vector.load %arg6[%c0_27, %c143] : memref<4x512xf32, #tpu.memory_space<vmem>>, vector<4x256xf32>
    %32 = vector.broadcast %6 : vector<1x256xf32> to vector<4x256xf32>
    %33 = arith.mulf %31, %32 : vector<4x256xf32>
    %c24 = arith.constant 24 : index
    %c0_28 = arith.constant 0 : index
    %34 = vector.load %arg7[%c24, %c0_28] : memref<40x256xf32, #tpu.memory_space<vmem>>, vector<4x256xf32>
    tpu.vector_store %arg7[%c24, %c0_28], %33 {strides = array<i32>} : memref<40x256xf32, #tpu.memory_space<vmem>>, vector<4x256xf32>,
    %c0_29 = arith.constant 0 : index
    %c144 = arith.constant 144 : index
    %35 = vector.load %arg6[%c0_29, %c144] : memref<4x512xf32, #tpu.memory_space<vmem>>, vector<4x256xf32>
    %c28 = arith.constant 28 : index
    %c0_30 = arith.constant 0 : index
    %36 = vector.load %arg7[%c28, %c0_30] : memref<40x256xf32, #tpu.memory_space<vmem>>, vector<4x256xf32>
    tpu.vector_store %arg7[%c28, %c0_30], %35 {strides = array<i32>} : memref<40x256xf32, #tpu.memory_space<vmem>>, vector<4x256xf32>,
    %c0_31 = arith.constant 0 : index
    %c145 = arith.constant 145 : index
    %37 = vector.load %arg6[%c0_31, %c145] : memref<4x512xf32, #tpu.memory_space<vmem>>, vector<4x256xf32>
    %38 = vector.broadcast %7 : vector<1x256xf32> to vector<4x256xf32>
    %39 = arith.mulf %37, %38 : vector<4x256xf32>
    %c32 = arith.constant 32 : index
    %c0_32 = arith.constant 0 : index
    %40 = vector.load %arg7[%c32, %c0_32] : memref<40x256xf32, #tpu.memory_space<vmem>>, vector<4x256xf32>
    tpu.vector_store %arg7[%c32, %c0_32], %39 {strides = array<i32>} : memref<40x256xf32, #tpu.memory_space<vmem>>, vector<4x256xf32>,
    %c0_33 = arith.constant 0 : index
    %c0_34 = arith.constant 0 : index
    %41 = vector.load %arg3[%c0_33, %c0_34] : memref<4x40xf32, #tpu.memory_space<vmem>>, vector<4x40xf32>
    %c0_35 = arith.constant 0 : index
    %c0_36 = arith.constant 0 : index
    %42 = vector.load %arg7[%c0_35, %c0_36] : memref<40x256xf32, #tpu.memory_space<vmem>>, vector<40x256xf32>
    %cst_37 = arith.constant dense<0.000000e+00> : vector<4x256xf32>
    %43 = tpu.matmul %41, %42, %cst_37 {dimension_numbers = #tpu.dot_dimension_numbers<[1], [0], [0], [1], [0, 0, 1, 1], [], []>} : vector<4x40xf32>, vector<40x256xf32>, vector<4x256xf32> -> vector<4x256xf32>
    %cst_38 = arith.constant 0.000000e+00 : f32
    %44 = vector.broadcast %cst_38 : f32 to vector<4x256xf32>
    %45 = arith.maximumf %43, %44 : vector<4x256xf32>
    %c0_39 = arith.constant 0 : index
    %c128_40 = arith.constant 128 : index
    %46 = vector.load %arg6[%c0_39, %c128_40] : memref<4x512xf32, #tpu.memory_space<vmem>>, vector<4x256xf32>
    tpu.vector_store %arg6[%c0_39, %c128_40], %45 {strides = array<i32>} : memref<4x512xf32, #tpu.memory_space<vmem>>, vector<4x256xf32>,
    %c0_41 = arith.constant 0 : index
    %c111_42 = arith.constant 111 : index
    %47 = vector.load %arg6[%c0_41, %c111_42] : memref<4x512xf32, #tpu.memory_space<vmem>>, vector<4x256xf32>
    %48 = vector.broadcast %6 : vector<1x256xf32> to vector<4x256xf32>
    %49 = arith.mulf %47, %48 : vector<4x256xf32>
    %c0_43 = arith.constant 0 : index
    %c0_44 = arith.constant 0 : index
    %50 = vector.load %arg7[%c0_43, %c0_44] : memref<40x256xf32, #tpu.memory_space<vmem>>, vector<4x256xf32>
    tpu.vector_store %arg7[%c0_43, %c0_44], %49 {strides = array<i32>} : memref<40x256xf32, #tpu.memory_space<vmem>>, vector<4x256xf32>,
    %c0_45 = arith.constant 0 : index
    %c112_46 = arith.constant 112 : index
    %51 = vector.load %arg6[%c0_45, %c112_46] : memref<4x512xf32, #tpu.memory_space<vmem>>, vector<4x256xf32>
    %c4_47 = arith.constant 4 : index
    %c0_48 = arith.constant 0 : index
    %52 = vector.load %arg7[%c4_47, %c0_48] : memref<40x256xf32, #tpu.memory_space<vmem>>, vector<4x256xf32>
    tpu.vector_store %arg7[%c4_47, %c0_48], %51 {strides = array<i32>} : memref<40x256xf32, #tpu.memory_space<vmem>>, vector<4x256xf32>,
    %c0_49 = arith.constant 0 : index
    %c113_50 = arith.constant 113 : index
    %53 = vector.load %arg6[%c0_49, %c113_50] : memref<4x512xf32, #tpu.memory_space<vmem>>, vector<4x256xf32>
    %54 = vector.broadcast %7 : vector<1x256xf32> to vector<4x256xf32>
    %55 = arith.mulf %53, %54 : vector<4x256xf32>
    %c8_51 = arith.constant 8 : index
    %c0_52 = arith.constant 0 : index
    %56 = vector.load %arg7[%c8_51, %c0_52] : memref<40x256xf32, #tpu.memory_space<vmem>>, vector<4x256xf32>
    tpu.vector_store %arg7[%c8_51, %c0_52], %55 {strides = array<i32>} : memref<40x256xf32, #tpu.memory_space<vmem>>, vector<4x256xf32>,
    %c0_53 = arith.constant 0 : index
    %c127_54 = arith.constant 127 : index
    %57 = vector.load %arg6[%c0_53, %c127_54] : memref<4x512xf32, #tpu.memory_space<vmem>>, vector<4x256xf32>
    %58 = vector.broadcast %6 : vector<1x256xf32> to vector<4x256xf32>
    %59 = arith.mulf %57, %58 : vector<4x256xf32>
    %c12_55 = arith.constant 12 : index
    %c0_56 = arith.constant 0 : index
    %60 = vector.load %arg7[%c12_55, %c0_56] : memref<40x256xf32, #tpu.memory_space<vmem>>, vector<4x256xf32>
    tpu.vector_store %arg7[%c12_55, %c0_56], %59 {strides = array<i32>} : memref<40x256xf32, #tpu.memory_space<vmem>>, vector<4x256xf32>,
    %c0_57 = arith.constant 0 : index
    %c128_58 = arith.constant 128 : index
    %61 = vector.load %arg6[%c0_57, %c128_58] : memref<4x512xf32, #tpu.memory_space<vmem>>, vector<4x256xf32>
    %c16_59 = arith.constant 16 : index
    %c0_60 = arith.constant 0 : index
    %62 = vector.load %arg7[%c16_59, %c0_60] : memref<40x256xf32, #tpu.memory_space<vmem>>, vector<4x256xf32>
    tpu.vector_store %arg7[%c16_59, %c0_60], %61 {strides = array<i32>} : memref<40x256xf32, #tpu.memory_space<vmem>>, vector<4x256xf32>,
    %c0_61 = arith.constant 0 : index
    %c129_62 = arith.constant 129 : index
    %63 = vector.load %arg6[%c0_61, %c129_62] : memref<4x512xf32, #tpu.memory_space<vmem>>, vector<4x256xf32>
    %64 = vector.broadcast %7 : vector<1x256xf32> to vector<4x256xf32>
    %65 = arith.mulf %63, %64 : vector<4x256xf32>
    %c20_63 = arith.constant 20 : index
    %c0_64 = arith.constant 0 : index
    %66 = vector.load %arg7[%c20_63, %c0_64] : memref<40x256xf32, #tpu.memory_space<vmem>>, vector<4x256xf32>
    tpu.vector_store %arg7[%c20_63, %c0_64], %65 {strides = array<i32>} : memref<40x256xf32, #tpu.memory_space<vmem>>, vector<4x256xf32>,
    %c0_65 = arith.constant 0 : index
    %c143_66 = arith.constant 143 : index
    %67 = vector.load %arg6[%c0_65, %c143_66] : memref<4x512xf32, #tpu.memory_space<vmem>>, vector<4x256xf32>
    %68 = vector.broadcast %6 : vector<1x256xf32> to vector<4x256xf32>
    %69 = arith.mulf %67, %68 : vector<4x256xf32>
    %c24_67 = arith.constant 24 : index
    %c0_68 = arith.constant 0 : index
    %70 = vector.load %arg7[%c24_67, %c0_68] : memref<40x256xf32, #tpu.memory_space<vmem>>, vector<4x256xf32>
    tpu.vector_store %arg7[%c24_67, %c0_68], %69 {strides = array<i32>} : memref<40x256xf32, #tpu.memory_space<vmem>>, vector<4x256xf32>,
    %c0_69 = arith.constant 0 : index
    %c144_70 = arith.constant 144 : index
    %71 = vector.load %arg6[%c0_69, %c144_70] : memref<4x512xf32, #tpu.memory_space<vmem>>, vector<4x256xf32>
    %c28_71 = arith.constant 28 : index
    %c0_72 = arith.constant 0 : index
    %72 = vector.load %arg7[%c28_71, %c0_72] : memref<40x256xf32, #tpu.memory_space<vmem>>, vector<4x256xf32>
    tpu.vector_store %arg7[%c28_71, %c0_72], %71 {strides = array<i32>} : memref<40x256xf32, #tpu.memory_space<vmem>>, vector<4x256xf32>,
    %c0_73 = arith.constant 0 : index
    %c145_74 = arith.constant 145 : index
    %73 = vector.load %arg6[%c0_73, %c145_74] : memref<4x512xf32, #tpu.memory_space<vmem>>, vector<4x256xf32>
    %74 = vector.broadcast %7 : vector<1x256xf32> to vector<4x256xf32>
    %75 = arith.mulf %73, %74 : vector<4x256xf32>
    %c32_75 = arith.constant 32 : index
    %c0_76 = arith.constant 0 : index
    %76 = vector.load %arg7[%c32_75, %c0_76] : memref<40x256xf32, #tpu.memory_space<vmem>>, vector<4x256xf32>
    tpu.vector_store %arg7[%c32_75, %c0_76], %75 {strides = array<i32>} : memref<40x256xf32, #tpu.memory_space<vmem>>, vector<4x256xf32>,
    %c0_77 = arith.constant 0 : index
    %c0_78 = arith.constant 0 : index
    %77 = vector.load %arg4[%c0_77, %c0_78] : memref<4x40xf32, #tpu.memory_space<vmem>>, vector<4x40xf32>
    %c0_79 = arith.constant 0 : index
    %c0_80 = arith.constant 0 : index
    %78 = vector.load %arg7[%c0_79, %c0_80] : memref<40x256xf32, #tpu.memory_space<vmem>>, vector<40x256xf32>
    %cst_81 = arith.constant dense<0.000000e+00> : vector<4x256xf32>
    %79 = tpu.matmul %77, %78, %cst_81 {dimension_numbers = #tpu.dot_dimension_numbers<[1], [0], [0], [1], [0, 0, 1, 1], [], []>} : vector<4x40xf32>, vector<40x256xf32>, vector<4x256xf32> -> vector<4x256xf32>
    %80 = arith.addf %79, %9 : vector<4x256xf32>
    %cst_82 = arith.constant 0.000000e+00 : f32
    %81 = vector.broadcast %cst_82 : f32 to vector<4x256xf32>
    %82 = arith.maximumf %80, %81 : vector<4x256xf32>
    %c0_83 = arith.constant 0 : index
    %c0_84 = arith.constant 0 : index
    %c0_85 = arith.constant 0 : index
    %83 = vector.load %arg5[%c0_83, %c0_84, %c0_85] : memref<1x4x256xf32, #tpu.memory_space<vmem>>, vector<1x4x256xf32>
    %84 = vector.shape_cast %83 : vector<1x4x256xf32> to vector<4x256xf32>
    %85 = vector.shape_cast %82 : vector<4x256xf32> to vector<1x4x256xf32>
    tpu.vector_store %arg5[%c0_83, %c0_84, %c0_85], %85 {strides = array<i32>} : memref<1x4x256xf32, #tpu.memory_space<vmem>>, vector<1x4x256xf32>,
    return
  }
  func.func @transform_0(%arg0: i32) -> (i32, i32, i32) {
    %c0_i32 = arith.constant 0 : i32
    %c0_i32_0 = arith.constant 0 : i32
    %c0_i32_1 = arith.constant 0 : i32
    return %arg0, %c0_i32, %c0_i32_0 : i32, i32, i32
  }
  func.func @transform_1(%arg0: i32) -> (i32, i32) {
    %c0_i32 = arith.constant 0 : i32
    %c0_i32_0 = arith.constant 0 : i32
    %c0_i32_1 = arith.constant 0 : i32
    return %c0_i32, %c0_i32_0 : i32, i32
  }
  func.func @transform_2(%arg0: i32) -> (i32, i32) {
    %c0_i32 = arith.constant 0 : i32
    %c0_i32_0 = arith.constant 0 : i32
    %c0_i32_1 = arith.constant 0 : i32
    return %c0_i32, %c0_i32_0 : i32, i32
  }
  func.func @transform_3(%arg0: i32) -> (i32, i32) {
    %c0_i32 = arith.constant 0 : i32
    %c0_i32_0 = arith.constant 0 : i32
    %c0_i32_1 = arith.constant 0 : i32
    return %c0_i32, %c0_i32_0 : i32, i32
  }
  func.func @transform_4(%arg0: i32) -> (i32, i32, i32) {
    %c0_i32 = arith.constant 0 : i32
    %c0_i32_0 = arith.constant 0 : i32
    %c0_i32_1 = arith.constant 0 : i32
    return %arg0, %c0_i32, %c0_i32_0 : i32, i32, i32
  }
}

</mosaic_0001>

<bundles_post_ra>
// kernel: basic_block_dec_forward.1
= control target key start
LH: loop header
LB: loop body
LE: loop exit
PB: predicated region body
PF: predicated region fallthrough
CT: control target
= control target key end

     0   :  { %s932_s15 = smov 0   ;;  %s1147_s0 = inlined_call_operand.vmem [shape: f32[2,4,256], index: 0, kind: input, shape index: {}]   ;;  %s1148_s1 = inlined_call_operand.vmem [shape: f32[2,256], index: 1, kind: input, shape index: {}]   ;;  %s1149_s2 = inlined_call_operand.vmem [shape: f32[4,40], index: 2, kind: input, shape index: {}]   ;;  %s1150_s3 = inlined_call_operand.vmem [shape: f32[4,40], index: 3, kind: input, shape index: {}]   ;;  %s1151_s4 = inlined_call_operand.vmem [shape: f32[2,4,256], index: 4, kind: output, shape index: {}]  }
   0x1 LB: > { %s845_s16 = sadd.s32 4294967295, %s895_s15   ;;  %p849_p0 = scmp.ge.s32.totalorder %s895_s15, 1  ;;  %s895_s15 = sphi %s932_s15, %s14_s15  }
   0x2   : > { %p162_p1 = scmp.lt.s32.totalorder %s895_s15, 3 }
   0x4   : > { %p163_p2 = pnand %p849_p0, %p162_p1 }
   0x5   : > { %p188_p3 = scmp.lt.s32.totalorder (!%p163_p2), %s845_s16, 1  ;;  %s898_s25 = smov (!%p163_p2), 1  }
   0x6   : > { %166 = sbr.rel (%p163_p2) target bundleno = 867 (0x363), region = 36  ;;  %s899_s26 = smov (!%p163_p2), 17  }
   0x7   : > { %s900_s27 = smov (!%p163_p2), 113   ;;  %s901_s28 = smov (!%p163_p2), 15  }
   0x8   : > { %s902_s29 = smov (!%p163_p2), 111   ;;  %s903_s30 = smov (!%p163_p2), 127  }
   0x9   : > { %s904_s5 = smov (!%p163_p2), 112   ;;  %s905_s6 = smov (!%p163_p2), 16  }
   0xb   : > { %v210_v0 = vlaneseq  ;;  %v897_v1 = vmov 0.0   ;;  %v854_v2 = vld [vmem:[%s1148_s1 + $0x1] ss:$2 sm:$0x3]  ;;  %s1153_s16 = smov (!%p188_p3, %s845_s16), 1  ;;  %vm252_vm0 = vcmask 138240  }
   0xc   : > { %199 = vst [vmem:[#allocation2 + $0x8] sm:$0xff] %v897_v1  ;;  %198 = vst [vmem:[#allocation2] sm:$0xff] %v897_v1  ;;  %523 = vmatprep.mubr.f32.mxu0 %v897_v1  ;;  %776 = vmatprep.mubr.f32.mxu1 %v897_v1  ;;  %v217_v4 = vld [vmem:[%s1148_s1] ss:$2 sm:$0x3]  ;;  %s859_s21 = sshll.u32 %s1153_s16, 3 }
   0xd   : > { %200 = vst [vmem:[#allocation3] sm:$0xff] %v897_v1  ;;  %201 = vst [vmem:[#allocation3 + $0x8] sm:$0xff] %v897_v1  ;;  %v226_v3 = vshrl.u32 %v210_v0, 7  ;;  %s192_s24 = scalar_lea.vmem %s1147_s0, %s859_s21  ;;  %vm308_vm1 = vcmask 121856   ;;  %vm320_vm2 = vcmask 1039360   ;;  %vm412_vm3 = vcmask 916480   ;;  %s197_s13 = scalar_lea.vmem %s1151_s4, %s859_s21 }
   0xe   : > { %202 = vst [vmem:[#allocation3 + $0x10] sm:$0xff] %v897_v1  ;;  %203 = vst [vmem:[#allocation3 + $0x18] sm:$0xff] %v897_v1  ;;  %v955_v12 = vld [vmem:[%s192_s24] sm:$0xff]  ;;  %vm212_vm4 = vcmp.lt.s32.totalorder %v210_v0, 256  ;;  %vm336_vm5 = vcmask 7168   ;;  %vm293_vm6 = vcmask 924672  }
   0xf   : > { %204 = vst [vmem:[#allocation3 + $0x20] sm:$0xff] %v897_v1  ;;  %205 = vst [vmem:[#allocation3 + $0x28] sm:$0xff] %v897_v1  ;;  %v227_v5 = vsub.s32 0, %v226_v3  ;;  %v231_v6 = vsub.s32 1, %v226_v3  ;;  %v404_v15 = vcombine.low %v955_v12, %v955_v12  ;;  %v992_v35 = vcombine.high %v955_v12, %v955_v12 }
  0x10   : > { %206 = vst [vmem:[#allocation3 + $0x30] sm:$0xff] %v897_v1  ;;  %207 = vst [vmem:[#allocation3 + $0x38] sm:$0xff] %v897_v1  ;;  %v906_v46 = vmov 1.0   ;;  %vm271_vm7 = vcmask 130048   ;;  %vm237_vm8 = vcmask 908288   ;;  %vm455_vm9 = vcmask 326656  }
  0x11   : > { %208 = vst [vmem:[#allocation3 + $0x40] sm:$0xff] %v897_v1  ;;  %209 = vst [vmem:[#allocation3 + $0x48] sm:$0xff] %v897_v1  ;;  %v284_v7 = vrot.slane %v854_v2, %v227_v5  ;;  %v288_v8 = vrot.slane %v854_v2, %v231_v6  ;;  %v228_v9 = vrot.slane %v217_v4, %v227_v5 }
  0x12   : > { %v232_v10 = vrot.slane %v217_v4, %v231_v6  ;;  %221 = vst [vmem:[#allocation2 + $0x4] sm:$0xff] %v955_v12  ;;  %347 = vst [vmem:[#allocation3 + $0x20] sm:$0xf] %v955_v12 }
  0x13   : > { %v289_v11 = vcombine.low %v284_v7, %v288_v8  ;;  %v879_v14 = vld [vmem:[#allocation2 + $0xc] ss:$0 sps:$4 sm:$0xff]   ;;  %348 = vst [vmem:[#allocation3 + $0x28] sm:$0xf] %v992_v35 }
  0x14   : > { %v233_v13 = vcombine.low %v228_v9, %v232_v10  ;;  %v420_v20 = vld [vmem:[#allocation2 + $0xc] sm:$0xf]  ;;  %215 = vst.msk [vmem:[#allocation3 + $0x44] ss:$8 sm:$0x3] %vm212_vm4, %v906_v46 }
  0x15   : > { %351 = vrot.lane.b32.xlu1 %v289_v11, %s898_s25  ;;  %421 = vrot.lane.b32.xlu0 %v289_v11, %s899_s26  ;;  %v376_v26 = vld [vmem:[#allocation2 + $0xc] sm:$0xf] }
  0x16   : > { %v350_v51 = vld [vmem:[#allocation2 + $0xc] sm:$0xf] }
  0x17   : > { %v677_v9 = vld [vmem:[#allocation2 + $0xc] sm:$0xf] }
  0x18   : > { %v640_v10 = vld [vmem:[#allocation2 + $0xc] sm:$0xf] }
  0x19   : > { %290 = vrot.lane.b32.xlu1 %v289_v11, %s900_s27  ;;  %377 = vrot.lane.b32.xlu0 %v233_v13, %s901_s28  ;;  %v881_v16 = vld [vmem:[#allocation2 + $0x8] ss:$0 sps:$4 sm:$0xff]   ;;  %v972_v17 = vld [vmem:[#allocation2] sm:$0xff] }
  0x1a   : > { %v279_v25 = vld [vmem:[#allocation2 + $0x8] sm:$0xf]  ;;  %v263_v8 = vcombine.low %v972_v17, %v972_v17 }
  0x1b   : > { %v223_v34 = vld [vmem:[#allocation2 + $0x8] sm:$0xf] }
  0x1c   : > { %v316_v52 = vld [vmem:[#allocation2 + $0x8] sm:$0xf] }
  0x1d   : > { %234 = vrot.lane.b32.xlu1 %v233_v13, %s902_s29  ;;  %317 = vrot.lane.b32.xlu0 %v233_v13, %s903_s30 }
  0x21   : > { %410 = vrot.lane.b32.xlu0 %v879_v14, %s904_s5  ;;  %408 = vrot.lane.b32.xlu1 %v955_v12, %s904_s5  ;;  %v620_v14 = vld [vmem:[#allocation2 + $0xc] sm:$0xf] }
  0x25   : > { %406 = vrot.lane.b32.xlu0 %v404_v15, %s904_s5  ;;  %269 = vrot.lane.b32.xlu1 %v881_v16, %s905_s6  ;;  %v883_v15 = vld [vmem:[#allocation2 + $0xc] ss:$0 sps:$4 sm:$0xff]  }
  0x29   : > { %267 = vrot.lane.b32.xlu0 %v972_v17, %s905_s6 }
  0x87   : > { %v352_v18 = vpop.permute.xlu1 %351  ;;  %v422_v19 = vpop.permute.xlu0 %421 }
  0x88   : > { %v976_v21 = vrot.slane %v422_v19, 4  ;;  %v1005_v40 = vrot.slane %v352_v18, 4 }
  0x8a   : > { %v428_v22 = vmul.f32 %v976_v21, %v420_v20  ;;  %v988_v31 = vsel %vm252_vm0, %v976_v21, %v422_v19  ;;  %v1024_v49 = vsel %vm336_vm5, %v1005_v40, %v352_v18  ;;  %v358_v58 = vmul.f32 %v1005_v40, %v350_v51 }
  0x8b   : > { %v291_v23 = vpop.permute.xlu1 %290  ;;  %v378_v24 = vpop.permute.xlu0 %377  ;;  %v427_v38 = vmul.f32 %v988_v31, %v955_v12  ;;  %v357_v56 = vmul.f32 %v1024_v49, %v955_v12  ;;  %v679_v11 = vmul.f32 %v677_v9, %v976_v21  ;;  %v622_v16 = vmul.f32 %v620_v14, %v1005_v40 }
  0x8c   : > { %v979_v27 = vrot.slane %v291_v23, 4  ;;  %v981_v28 = vrot.slane %v378_v24, 4  ;;  %436 = vrot.lane.b32.xlu1 %v428_v22, %s902_s29  ;;  %v362_v62 = vcombine.low %v358_v58, %v358_v58 }
  0x8d   : > { %v431_v0 = vcombine.high %v427_v38, %v427_v38  ;;  %v361_v5 = vcombine.low %v357_v56, %v357_v56 }
  0x8e   : > { %v298_v29 = vmul.f32 %v979_v27, %v279_v25  ;;  %v384_v30 = vmul.f32 %v981_v28, %v376_v26  ;;  %v1009_v41 = vsel %vm308_vm1, %v981_v28, %v378_v24  ;;  %v1028_v50 = vsel %vm293_vm6, %v979_v27, %v291_v23 }
  0x8f   : > { %v235_v32 = vpop.permute.xlu1 %234  ;;  %v318_v33 = vpop.permute.xlu0 %317  ;;  %v383_v47 = vmul.f32 %v1009_v41, %v955_v12  ;;  %v297_v57 = vmul.f32 %v1028_v50, %v972_v17  ;;  %v642_v13 = vmul.f32 %v640_v10, %v981_v28 }
  0x90   : > { %v994_v36 = vrot.slane %v235_v32, 4  ;;  %v996_v37 = vrot.slane %v318_v33, 4  ;;  %306 = vrot.lane.b32.xlu1 %v298_v29, %s901_s28  ;;  %392 = vrot.lane.b32.xlu0 %v384_v30, %s900_s27 }
  0x91   : > { %v387_v1 = vcombine.high %v383_v47, %v383_v47  ;;  %v301_v4 = vcombine.high %v297_v57, %v297_v57 }
  0x92   : > { %v242_v39 = vmul.f32 %v994_v36, %v223_v34  ;;  %v1013_v42 = vsel %vm320_vm2, %v996_v37, %v318_v33  ;;  %v325_v59 = vmul.f32 %v996_v37, %v316_v52  ;;  %v1049_v2 = vsel %vm237_vm8, %v994_v36, %v235_v32 }
  0x93   : > { %v411_v43 = vpop.permute.xlu0 %410  ;;  %v409_v44 = vpop.permute.xlu1 %408  ;;  %v324_v48 = vmul.f32 %v1013_v42, %v972_v17  ;;  %v241_v3 = vmul.f32 %v972_v17, %v1049_v2  ;;  %v626_v17 = vcombine.low %v622_v16, %v622_v16 }
  0x94   : > { %432 = vrot.lane.b32.xlu0 %v427_v38, %s902_s29  ;;  %250 = vrot.lane.b32.xlu1 %v242_v39, %s899_s26  ;;  %v414_v45 = vsel %vm412_vm3, %v409_v44, %v411_v43  ;;  %v329_v63 = vcombine.low %v325_v59, %v325_v59 }
  0x95   : > { %418 = vst [vmem:[#allocation3 + $0x38] sm:$0xf0] %v414_v45  ;;  %v328_v6 = vcombine.low %v324_v48, %v324_v48  ;;  %v245_v7 = vcombine.high %v241_v3, %v241_v3 }
  0x97   : > { %v407_v53 = vpop.permute.xlu0 %406  ;;  %v270_v55 = vpop.permute.xlu1 %269 }
  0x98   : > { %332 = vrot.lane.b32.xlu0 %v324_v48, %s898_s25  ;;  %388 = vrot.lane.b32.xlu1 %v383_v47, %s900_s27  ;;  %v413_v54 = vsel %vm412_vm3, %v407_v53, %v409_v44 }
  0x99   : > { %417 = vst [vmem:[#allocation3 + $0x30] sm:$0xf0] %v413_v54 }
  0x9b   : > { %v1039_v60 = vpop.permute.xlu0 %267 }
  0x9c   : > { %302 = vrot.lane.b32.xlu0 %v297_v57, %s901_s28  ;;  %365 = vrot.lane.b32.xlu1 %v357_v56, %s903_s30  ;;  %v273_v61 = vsel %vm271_vm7, %v1039_v60, %v270_v55 }
  0x9d   : > { %277 = vst [vmem:[#allocation3 + $0x8] sm:$0xf0] %v273_v61 }
  0xa0   : > { %367 = vrot.lane.b32.xlu0 %v362_v62, %s903_s30  ;;  %334 = vrot.lane.b32.xlu1 %v329_v63, %s898_s25 }
  0xa4   : > { %434 = vrot.lane.b32.xlu0 %v431_v0, %s902_s29  ;;  %390 = vrot.lane.b32.xlu1 %v387_v1, %s900_s27 }
  0xa8   : > { %304 = vrot.lane.b32.xlu0 %v301_v4, %s901_s28  ;;  %363 = vrot.lane.b32.xlu1 %v361_v5, %s903_s30 }
  0xac   : > { %330 = vrot.lane.b32.xlu1 %v328_v6, %s898_s25  ;;  %248 = vrot.lane.b32.xlu0 %v245_v7, %s899_s26  ;;  %v444_v6 = vld [vmem:[%s1149_s2] sm:$0xf] }
  0xb0   : > { %265 = vrot.lane.b32.xlu1 %v263_v8, %s905_s6  ;;  %246 = vrot.lane.b32.xlu0 %v241_v3, %s899_s26 }
  0xb4   : > { %687 = vrot.lane.b32.xlu1 %v679_v11, %s902_s29  ;;  %650 = vrot.lane.b32.xlu0 %v642_v13, %s900_s27 }
  0xb8   : > { %668 = vrot.lane.b32.xlu0 %v883_v15, %s904_s5 }
  0xbc   : > { %631 = vrot.lane.b32.xlu0 %v626_v17, %s903_s30 }
  0xfe   : > { %v437_v18 = vpop.permute.xlu1 %436 }
 0x102   : > { %v307_v19 = vpop.permute.xlu1 %306  ;;  %v393_v20 = vpop.permute.xlu0 %392 }
 0x106   : > { %v433_v22 = vpop.permute.xlu0 %432  ;;  %v251_v21 = vpop.permute.xlu1 %250 }
 0x10a   : > { %v333_v23 = vpop.permute.xlu0 %332  ;;  %v389_v24 = vpop.permute.xlu1 %388 }
 0x10e   : > { %v303_v25 = vpop.permute.xlu0 %302  ;;  %v366_v26 = vpop.permute.xlu1 %365 }
 0x112   : > { %v368_v28 = vpop.permute.xlu0 %367  ;;  %v335_v29 = vpop.permute.xlu1 %334 }
 0x113   : > { %v370_v30 = vsel %vm320_vm2, %v366_v26, %v368_v28  ;;  %v338_v32 = vsel %vm336_vm5, %v333_v23, %v335_v29 }
 0x114   : > { %374 = vst [vmem:[#allocation3 + $0x28] sm:$0xf0] %v370_v30  ;;  %342 = vst [vmem:[#allocation3 + $0x18] sm:$0xf0] %v338_v32 }
 0x116   : > { %v435_v33 = vpop.permute.xlu0 %434  ;;  %v391_v34 = vpop.permute.xlu1 %390 }
 0x117   : > { %v438_v38 = vsel %vm237_vm8, %v433_v22, %v435_v33  ;;  %v439_v39 = vsel %vm237_vm8, %v435_v33, %v437_v18  ;;  %v394_v40 = vsel %vm293_vm6, %v389_v24, %v391_v34  ;;  %v395_v43 = vsel %vm293_vm6, %v391_v34, %v393_v20 }
 0x118   : > { %442 = vst [vmem:[#allocation3 + $0x40] sm:$0xf] %v438_v38  ;;  %443 = vst [vmem:[#allocation3 + $0x48] sm:$0xf] %v439_v39 }
 0x119   : > { %398 = vst [vmem:[#allocation3 + $0x30] sm:$0xf] %v394_v40  ;;  %399 = vst [vmem:[#allocation3 + $0x38] sm:$0xf] %v395_v43 }
 0x11a   : > { %v305_v44 = vpop.permute.xlu0 %304  ;;  %v364_v45 = vpop.permute.xlu1 %363 }
 0x11b   : > { %v309_v46 = vsel %vm308_vm1, %v303_v25, %v305_v44  ;;  %v310_v47 = vsel %vm308_vm1, %v305_v44, %v307_v19  ;;  %v369_v48 = vsel %vm320_vm2, %v364_v45, %v366_v26  ;;  %v450_v0 = vld [vmem:[#allocation3 + $0x28] sm:$0xff] }
 0x11c   : > { %313 = vst [vmem:[#allocation3 + $0x10] sm:$0xf] %v309_v46  ;;  %314 = vst [vmem:[#allocation3 + $0x18] sm:$0xf] %v310_v47 }
 0x11d   : > { %373 = vst [vmem:[#allocation3 + $0x20] sm:$0xf0] %v369_v48 }
 0x11e   : > { %v331_v51 = vpop.permute.xlu1 %330  ;;  %v249_v52 = vpop.permute.xlu0 %248 }
 0x11f   : > { %v337_v53 = vsel %vm336_vm5, %v331_v51, %v333_v23  ;;  %v254_v54 = vsel %vm252_vm0, %v249_v52, %v251_v21  ;;  %v454_v55 = vld [vmem:[#allocation3 + $0x48] sm:$0xff]  ;;  %v453_v56 = vld [vmem:[#allocation3 + $0x40] sm:$0xff] }
 0x120   : > { %341 = vst [vmem:[#allocation3 + $0x10] sm:$0xf0] %v337_v53  ;;  %258 = vst [vmem:[#allocation3 + $0x8] sm:$0xf] %v254_v54  ;;  %481 = vmatprep.subr.mxu0 %v454_v55  ;;  %v452_v57 = vld [vmem:[#allocation3 + $0x38] sm:$0xff]  ;;  %v451_v61 = vld [vmem:[#allocation3 + $0x30] sm:$0xff] }
 0x121   : > { %482 = vmatpush1.msra.mxu0 %v453_v56 }
 0x122   : > { %483 = vmatprep.subr.mxu0 %v452_v57  ;;  %v266_v58 = vpop.permute.xlu1 %265  ;;  %v247_v59 = vpop.permute.xlu0 %246 }
 0x123   : > { %v272_v62 = vsel %vm271_vm7, %v266_v58, %v1039_v60  ;;  %v253_v63 = vsel %vm252_vm0, %v247_v59, %v249_v52  ;;  %484 = vmatpush1.msra.mxu0 %v451_v61  ;;  %v448_v3 = vld [vmem:[#allocation3 + $0x18] sm:$0xff] }
 0x124   : > { %v449_v1 = vld [vmem:[#allocation3 + $0x20] sm:$0xff]  ;;  %276 = vst [vmem:[#allocation3] sm:$0xf0] %v272_v62  ;;  %257 = vst [vmem:[#allocation3] sm:$0xf] %v253_v63  ;;  %485 = vmatprep.subr.mxu0 %v450_v0 }
 0x125   : > { %486 = vmatpush1.msra.mxu0 %v449_v1 }
 0x126   : > { %487 = vmatprep.subr.mxu0 %v448_v3  ;;  %v688_v32 = vpop.permute.xlu1 %687 }
 0x127   : > { %v447_v4 = vld [vmem:[#allocation3 + $0x10] sm:$0xff]  ;;  %v446_v5 = vld [vmem:[#allocation3 + $0x8] sm:$0xff] }
 0x128   : > { %488 = vmatpush1.msra.mxu0 %v447_v4 }
 0x129   : > { %489 = vmatprep.subr.mxu0 %v446_v5 }
 0x12b   : > { %v445_v60 = vld [vmem:[#allocation3] sm:$0xff] }
 0x12c   : > { %490 = vmatpush1.msra.mxu0 %v445_v60 }
 0x12d   : > { %855 = vmatmul.mubr.msk.f32.vlgmr.msra.gmra.mxu0 %vm455_vm9, %v444_v6 }
 0x1ed   : > { %v525_v7 = vpop.f32.mrf.mxu0 }
 0x1ee   : > { %v530_v9 = vmax.f32 %v525_v7, 0.0 }
 0x1ef   : > { %v527_v8 = vpop.f32.mrf.mxu0 }
 0x1f0   : > { %v531_v10 = vmax.f32 %v527_v8, 0.0 }
 0x1f2   : > { %v534_v11 = vcombine.low %v530_v9, %v531_v10  ;;  %v887_v13 = vcombine.low %v531_v10, %v531_v10 }
 0x1f4   : > { %536 = vst [vmem:[#allocation2 + $0x4] sm:$0xff] %v534_v11  ;;  %666 = vrot.lane.b32.xlu1 %v534_v11, %s904_s5  ;;  %617 = vst [vmem:[#allocation3 + $0x20] sm:$0xf] %v534_v11  ;;  %v641_v14 = vmul.f32 %v534_v11, %v1009_v41  ;;  %v621_v15 = vmul.f32 %v534_v11, %v1024_v49  ;;  %v678_v18 = vmul.f32 %v534_v11, %v988_v31 }
 0x1f5   : > { %618 = vst [vmem:[#allocation3 + $0x28] sm:$0xf] %v887_v13  ;;  %v888_v41 = vcombine.low %v530_v9, %v530_v9 }
 0x1f6   : > { %v645_v31 = vcombine.high %v641_v14, %v641_v14  ;;  %v625_v24 = vcombine.low %v621_v15, %v621_v15 }
 0x1f8   : > { %646 = vrot.lane.b32.xlu1 %v641_v14, %s900_s27 }
 0x1fb   : > { %v556_v16 = vld [vmem:[#allocation2] sm:$0xff]  ;;  %v575_v17 = vld [vmem:[#allocation2 + $0x8] sm:$0xf] }
 0x1fc   : > { %564 = vrot.lane.b32.xlu0 %v556_v16, %s905_s6  ;;  %629 = vrot.lane.b32.xlu1 %v621_v15, %s903_s30  ;;  %v577_v19 = vmul.f32 %v575_v17, %v979_v27  ;;  %v538_v20 = vld [vmem:[#allocation2 + $0x8] sm:$0xf]  ;;  %v595_v49 = vmul.f32 %v556_v16, %v1013_v42  ;;  %v576_v27 = vmul.f32 %v556_v16, %v1028_v50 }
 0x1fd   : > { %v540_v22 = vmul.f32 %v538_v20, %v994_v36  ;;  %v886_v21 = vld [vmem:[#allocation2 + $0x8] ss:$0 sps:$4 sm:$0xff]   ;;  %v682_v36 = vcombine.high %v678_v18, %v678_v18  ;;  %v539_v26 = vmul.f32 %v556_v16, %v1049_v2  ;;  %v560_v30 = vcombine.low %v556_v16, %v556_v16 }
 0x1fe   : > { %v594_v23 = vld [vmem:[#allocation2 + $0x8] sm:$0xf]  ;;  %v580_v42 = vcombine.high %v576_v27, %v576_v27  ;;  %v599_v29 = vcombine.low %v595_v49, %v595_v49 }
 0x1ff   : > { %v596_v25 = vmul.f32 %v594_v23, %v996_v37  ;;  %v543_v50 = vcombine.high %v539_v26, %v539_v26  ;;  %v651_v37 = vpop.permute.xlu0 %650 }
 0x200   : > { %683 = vrot.lane.b32.xlu0 %v678_v18, %s902_s29  ;;  %585 = vrot.lane.b32.xlu1 %v577_v19, %s901_s28 }
 0x201   : > { %v600_v28 = vcombine.low %v596_v25, %v596_v25 }
 0x203   : > { %v669_v33 = vpop.permute.xlu0 %668 }
 0x204   : > { %664 = vrot.lane.b32.xlu0 %v888_v41, %s904_s5  ;;  %548 = vrot.lane.b32.xlu1 %v540_v22, %s899_s26 }
 0x207   : > { %v632_v38 = vpop.permute.xlu0 %631 }
 0x208   : > { %603 = vrot.lane.b32.xlu0 %v595_v49, %s898_s25  ;;  %566 = vrot.lane.b32.xlu1 %v886_v21, %s905_s6  ;;  %v695_v21 = vld [vmem:[%s1150_s3] sm:$0xf] }
 0x20c   : > { %581 = vrot.lane.b32.xlu0 %v576_v27, %s901_s28  ;;  %648 = vrot.lane.b32.xlu1 %v645_v31, %s900_s27 }
 0x210   : > { %685 = vrot.lane.b32.xlu0 %v682_v36, %s902_s29  ;;  %627 = vrot.lane.b32.xlu1 %v625_v24, %s903_s30 }
 0x214   : > { %583 = vrot.lane.b32.xlu0 %v580_v42, %s901_s28  ;;  %605 = vrot.lane.b32.xlu1 %v600_v28, %s898_s25 }
 0x218   : > { %546 = vrot.lane.b32.xlu0 %v543_v50, %s899_s26  ;;  %601 = vrot.lane.b32.xlu1 %v599_v29, %s898_s25 }
 0x21c   : > { %544 = vrot.lane.b32.xlu0 %v539_v26, %s899_s26  ;;  %562 = vrot.lane.b32.xlu1 %v560_v30, %s905_s6 }
 0x266   : > { %v667_v2 = vpop.permute.xlu1 %666 }
 0x267   : > { %v671_v34 = vsel %vm412_vm3, %v667_v2, %v669_v33 }
 0x268   : > { %675 = vst [vmem:[#allocation3 + $0x38] sm:$0xf0] %v671_v34 }
 0x26a   : > { %v647_v39 = vpop.permute.xlu1 %646 }
 0x26e   : > { %v565_v40 = vpop.permute.xlu0 %564  ;;  %v630_v43 = vpop.permute.xlu1 %629 }
 0x26f   : > { %v634_v44 = vsel %vm320_vm2, %v630_v43, %v632_v38 }
 0x270   : > { %638 = vst [vmem:[#allocation3 + $0x28] sm:$0xf0] %v634_v44 }
 0x272   : > { %v684_v45 = vpop.permute.xlu0 %683  ;;  %v586_v46 = vpop.permute.xlu1 %585 }
 0x276   : > { %v665_v47 = vpop.permute.xlu0 %664  ;;  %v549_v48 = vpop.permute.xlu1 %548 }
 0x277   : > { %v670_v51 = vsel %vm412_vm3, %v665_v47, %v667_v2  ;;  %v701_v18 = vld [vmem:[#allocation3 + $0x28] sm:$0xff] }
 0x278   : > { %674 = vst [vmem:[#allocation3 + $0x30] sm:$0xf0] %v670_v51 }
 0x27a   : > { %v604_v52 = vpop.permute.xlu0 %603  ;;  %v567_v53 = vpop.permute.xlu1 %566 }
 0x27b   : > { %v569_v54 = vsel %vm271_vm7, %v565_v40, %v567_v53 }
 0x27c   : > { %573 = vst [vmem:[#allocation3 + $0x8] sm:$0xf0] %v569_v54 }
 0x27e   : > { %v582_v55 = vpop.permute.xlu0 %581  ;;  %v649_v56 = vpop.permute.xlu1 %648 }
 0x27f   : > { %v652_v57 = vsel %vm293_vm6, %v647_v39, %v649_v56  ;;  %v653_v58 = vsel %vm293_vm6, %v649_v56, %v651_v37 }
 0x280   : > { %656 = vst [vmem:[#allocation3 + $0x30] sm:$0xf] %v652_v57  ;;  %657 = vst [vmem:[#allocation3 + $0x38] sm:$0xf] %v653_v58 }
 0x282   : > { %v686_v59 = vpop.permute.xlu0 %685  ;;  %v628_v61 = vpop.permute.xlu1 %627 }
 0x283   : > { %v689_v62 = vsel %vm237_vm8, %v684_v45, %v686_v59  ;;  %v690_v63 = vsel %vm237_vm8, %v686_v59, %v688_v32  ;;  %v633_v0 = vsel %vm320_vm2, %v628_v61, %v630_v43 }
 0x284   : > { %693 = vst [vmem:[#allocation3 + $0x40] sm:$0xf] %v689_v62  ;;  %694 = vst [vmem:[#allocation3 + $0x48] sm:$0xf] %v690_v63 }
 0x285   : > { %637 = vst [vmem:[#allocation3 + $0x20] sm:$0xf0] %v633_v0 }
 0x286   : > { %v584_v1 = vpop.permute.xlu0 %583  ;;  %v606_v3 = vpop.permute.xlu1 %605 }
 0x287   : > { %v587_v4 = vsel %vm308_vm1, %v582_v55, %v584_v1  ;;  %v588_v5 = vsel %vm308_vm1, %v584_v1, %v586_v46  ;;  %v608_v6 = vsel %vm336_vm5, %v604_v52, %v606_v3  ;;  %v703_v13 = vld [vmem:[#allocation3 + $0x38] sm:$0xff]  ;;  %v702_v15 = vld [vmem:[#allocation3 + $0x30] sm:$0xff] }
 0x288   : > { %591 = vst [vmem:[#allocation3 + $0x10] sm:$0xf] %v587_v4  ;;  %592 = vst [vmem:[#allocation3 + $0x18] sm:$0xf] %v588_v5 }
 0x289   : > { %612 = vst [vmem:[#allocation3 + $0x18] sm:$0xf0] %v608_v6 }
 0x28a   : > { %v547_v60 = vpop.permute.xlu0 %546  ;;  %v602_v7 = vpop.permute.xlu1 %601 }
 0x28b   : > { %v551_v8 = vsel %vm252_vm0, %v547_v60, %v549_v48  ;;  %v705_v9 = vld [vmem:[#allocation3 + $0x48] sm:$0xff]  ;;  %v704_v10 = vld [vmem:[#allocation3 + $0x40] sm:$0xff]  ;;  %v607_v11 = vsel %vm336_vm5, %v602_v7, %v604_v52 }
 0x28c   : > { %555 = vst [vmem:[#allocation3 + $0x8] sm:$0xf] %v551_v8  ;;  %734 = vmatprep.subr.mxu1 %v705_v9  ;;  %611 = vst [vmem:[#allocation3 + $0x10] sm:$0xf0] %v607_v11  ;;  %v700_v20 = vld [vmem:[#allocation3 + $0x20] sm:$0xff] }
 0x28d   : > { %735 = vmatpush1.msra.mxu1 %v704_v10 }
 0x28e   : > { %v545_v14 = vpop.permute.xlu0 %544  ;;  %736 = vmatprep.subr.mxu1 %v703_v13  ;;  %v563_v16 = vpop.permute.xlu1 %562 }
 0x28f   : > { %v550_v17 = vsel %vm252_vm0, %v545_v14, %v547_v60  ;;  %737 = vmatpush1.msra.mxu1 %v702_v15  ;;  %v568_v19 = vsel %vm271_vm7, %v563_v16, %v565_v40 }
 0x290   : > { %554 = vst [vmem:[#allocation3] sm:$0xf] %v550_v17  ;;  %738 = vmatprep.subr.mxu1 %v701_v18  ;;  %572 = vst [vmem:[#allocation3] sm:$0xf0] %v568_v19  ;;  %v699_v41 = vld [vmem:[#allocation3 + $0x18] sm:$0xff] }
 0x291   : > { %739 = vmatpush1.msra.mxu1 %v700_v20 }
 0x292   : > { %740 = vmatprep.subr.mxu1 %v699_v41 }
 0x293   : > { %v698_v22 = vld [vmem:[#allocation3 + $0x10] sm:$0xff]  ;;  %v697_v49 = vld [vmem:[#allocation3 + $0x8] sm:$0xff] }
 0x294   : > { %741 = vmatpush1.msra.mxu1 %v698_v22 }
 0x295   : > { %742 = vmatprep.subr.mxu1 %v697_v49 }
 0x297   : > { %v696_v27 = vld [vmem:[#allocation3] sm:$0xff] }
 0x298   : > { %743 = vmatpush1.msra.mxu1 %v696_v27 }
 0x299   : > { %856 = vmatmul.mubr.msk.f32.vlgmr.msra.gmra.mxu1 %vm455_vm9, %v695_v21 }
 0x359   : > { %v778_v31 = vpop.f32.mrf.mxu1 }
 0x35a   : > { %v779_v23 = vadd.f32 %v778_v31, %v955_v12 }
 0x35b   : > { %v780_v36 = vpop.f32.mrf.mxu1 }
 0x35c   : > { %v781_v24 = vadd.f32 %v780_v36, %v992_v35  ;;  %v783_v25 = vmax.f32 %v779_v23, 0.0 }
 0x35e   : > { %v784_v42 = vmax.f32 %v781_v24, 0.0 }
 0x360   : > { %v787_v26 = vcombine.low %v783_v25, %v784_v42 }
 0x362   : > { %789 = vst [vmem:[%s197_s13] sm:$0xff] %v787_v26 }
 0x363 PF: > { %s14_s15 = sadd.s32 1, %s895_s15  }
 0x364   : > { %p11_p4 = scmp.ge.s32.totalorder %s14_s15, 4  }
 0x366   :  { %13 = sbr.rel (!%p11_p4) target bundleno = 1 (0x1), region = 68 }

</bundles_post_ra>
